<compile_context>
chip_gen: v6e
topology: v6e:2x2x1
jax: 0.10.0
libtpu: 0.0.40
codegen_flags: <defaults>
</compile_context>

<pallas_src>
import functools

import jax
import jax.numpy as jnp
from jax.experimental import pallas as pl
from jax.experimental.pallas import tpu as pltpu


def _round_up(x, m):
    return ((x + m - 1) // m) * m


def _cdiv(a, b):
    return (a + b - 1) // b


def transo_kernel(pe_ref, pr_ref, h_ref, r_ref, t_ref, etype_ref, rtype_ref,
                  out_ref, *, dim, num_e, num_r, matmul_dtype):
    """Scores TILE_B triples per grid step.

    pe_ref:    (K_e*D, D) stacked entity-type projections   (VMEM resident)
    pr_ref:    (K_r*D, D) stacked relation-type projections (VMEM resident)
    h/r/t_ref: (D, TILE_B) head / relation / tail embeddings, batch on lanes
    etype_ref, rtype_ref: (1, TILE_B) int32 type ids
    out_ref:   (1, TILE_B) lane-dense L2 scores
    """
    z = h_ref[...] - t_ref[...]            # (D, TB) fused head - tail, f32 VPU
    etype = etype_ref[...]                 # (1, TB) int32
    rtype = rtype_ref[...]                 # (1, TB) int32

    # Two stacked MXU matmuls (one per projection table) instead of K_e + K_r
    # tiny (D, D) @ (D, TB) calls.  Operands in bf16 (default) for native MXU
    # throughput; accumulation stays f32.
    se = jnp.dot(pe_ref[...].astype(matmul_dtype), z.astype(matmul_dtype),
                 preferred_element_type=jnp.float32)          # (K_e*D, TB)
    sr = jnp.dot(pr_ref[...].astype(matmul_dtype),
                 r_ref[...].astype(matmul_dtype),
                 preferred_element_type=jnp.float32)          # (K_r*D, TB)

    # Per-column type select over row-slices of the stacked results.
    # NOTE: out-of-range type ids silently yield proj == 0 (score 0) here,
    # unlike a PyTorch gather; they are validated host-side in the demo.
    # TODO(synk): if K_e + K_r grows large, sort triples by type in the
    # wrapper and pass per-tile type ids via scalar prefetch instead of masks.
    proj = jnp.zeros(z.shape, jnp.float32)
    for k in range(num_e):
        proj = proj + jnp.where(etype == k, se[k * dim:(k + 1) * dim, :], 0.0)
    for k in range(num_r):
        proj = proj + jnp.where(rtype == k, sr[k * dim:(k + 1) * dim, :], 0.0)

    # Embedding-dim reduction along sublanes -> lane-dense (1, TB) output.
    out_ref[...] = jnp.sqrt(jnp.sum(proj * proj, axis=0, keepdims=True))


def transo_scores(pe_stack, pr_stack, h_t, r_t, t_t, entity_types,
                  relation_types, *, tile_b=2048, matmul_dtype=jnp.bfloat16):
    """pe_stack/pr_stack: (K*D, D) stacked projection tables.
    h_t/r_t/t_t: (D, B) transposed embeddings.  Returns (B,) scores."""
    D = pe_stack.shape[1]
    K_e = pe_stack.shape[0] // D
    K_r = pr_stack.shape[0] // D
    B = h_t.shape[1]

    assert tile_b % 128 == 0, "tile_b must be a multiple of 128"
    Bp128 = _round_up(B, 128)
    # Pick the number of tiles first: large tiles amortize the ~0.35us/step
    # pipeline overhead, but keep >= 2 grid steps whenever the batch allows it
    # so the "parallel" axis shards across both TensorCores on v7x.
    ntiles = _cdiv(Bp128, tile_b)
    if Bp128 >= 256:
        ntiles = max(ntiles, 2)
    tb = _round_up(_cdiv(Bp128, ntiles), 128)
    Bp = tb * ntiles
    pad = Bp - B

    if pad:
        h_t = jnp.pad(h_t, ((0, 0), (0, pad)))
        r_t = jnp.pad(r_t, ((0, 0), (0, pad)))
        t_t = jnp.pad(t_t, ((0, 0), (0, pad)))
        entity_types = jnp.pad(entity_types, (0, pad))
        relation_types = jnp.pad(relation_types, (0, pad))

    et = entity_types.astype(jnp.int32).reshape(1, Bp)
    rt = relation_types.astype(jnp.int32).reshape(1, Bp)

    kernel = functools.partial(transo_kernel, dim=D, num_e=K_e, num_r=K_r,
                               matmul_dtype=matmul_dtype)

    cost = pl.CostEstimate(
        flops=2 * D * D * Bp * (K_e + K_r) + 3 * D * Bp,
        transcendentals=Bp,
        bytes_accessed=4 * (3 * D * Bp + 3 * Bp + (K_e + K_r) * D * D),
    )

    out = pl.pallas_call(
        kernel,
        out_shape=jax.ShapeDtypeStruct((1, Bp), jnp.float32),
        grid_spec=pltpu.PrefetchScalarGridSpec(
            num_scalar_prefetch=0,
            grid=(Bp // tb,),
            in_specs=[
                # Stacked projection tables: constant block index -> fetched
                # once, VMEM resident across the grid.  (Single-buffering them
                # via pipeline_mode is only worth it at large D; omitted.)
                pl.BlockSpec((K_e * D, D), lambda i: (0, 0)),
                pl.BlockSpec((K_r * D, D), lambda i: (0, 0)),
                # Transposed embedding streams, batch on lanes.
                pl.BlockSpec((D, tb), lambda i: (0, i)),
                pl.BlockSpec((D, tb), lambda i: (0, i)),
                pl.BlockSpec((D, tb), lambda i: (0, i)),
                # Per-triple type ids.
                pl.BlockSpec((1, tb), lambda i: (0, i)),
                pl.BlockSpec((1, tb), lambda i: (0, i)),
            ],
            out_specs=pl.BlockSpec((1, tb), lambda i: (0, i)),
        ),
        compiler_params=pltpu.CompilerParams(
            dimension_semantics=("parallel",),
            # Above v5e's 16 MiB default scoped limit; below v7x's 64 MiB
            # physical VMEM.  Actual demand at D=32, tb=2048 is ~3 MiB.
            vmem_limit_bytes=48 * 1024 * 1024,
        ),
        cost_estimate=cost,
    )(pe_stack, pr_stack, h_t, r_t, t_t, et, rt)

    return out[0, :B]  # (B,)


class TransOParams:
    """Deterministic synthetic parameter initialization (uniform(-0.1, 0.1))."""

    def __init__(self, key, num_entities, num_relations, num_entity_types,
                 num_relation_types, embedding_dim):
        self.embedding_dim = embedding_dim
        k1, k2, k3, k4 = jax.random.split(key, 4)
        u = lambda k, shape: jax.random.uniform(
            k, shape, dtype=jnp.float32, minval=-0.1, maxval=0.1)
        self.entity_embeddings = u(k1, (num_entities, embedding_dim))
        self.relation_embeddings = u(k2, (num_relations, embedding_dim))
        # Pre-transposed (D, N) copies, built once at init: the forward
        # gathers columns so the batch axis lands on lanes with no
        # post-gather transpose (perf-review layout item).
        self.entity_embeddings_t = self.entity_embeddings.T
        self.relation_embeddings_t = self.relation_embeddings.T
        self.entity_type_projections = u(
            k3, (num_entity_types, embedding_dim * embedding_dim))
        self.relation_type_projections = u(
            k4, (num_relation_types, embedding_dim * embedding_dim))


def transo_forward(params, heads, relations, tails, entity_types,
                   relation_types, *, tile_b=2048, matmul_dtype=jnp.bfloat16):
    D = params.embedding_dim
    # Column gathers from the pre-transposed tables -> (D, B), batch on lanes.
    h_t = jnp.take(params.entity_embeddings_t, heads, axis=1)
    r_t = jnp.take(params.relation_embeddings_t, relations, axis=1)
    t_t = jnp.take(params.entity_embeddings_t, tails, axis=1)
    # Stacked (K*D, D) projection tables go into the kernel whole (no gather).
    pe_stack = params.entity_type_projections.reshape(-1, D)    # (K_e*D, D)
    pr_stack = params.relation_type_projections.reshape(-1, D)  # (K_r*D, D)
    return transo_scores(pe_stack, pr_stack, h_t, r_t, t_t,
                         entity_types, relation_types,
                         tile_b=tile_b, matmul_dtype=matmul_dtype)


def transo_reference(params, heads, relations, tails, entity_types,
                     relation_types):
    """Pure-JAX reference mirroring the PyTorch forward."""
    D = params.embedding_dim
    h = jnp.take(params.entity_embeddings, heads, axis=0)
    r = jnp.take(params.relation_embeddings, relations, axis=0)
    t = jnp.take(params.entity_embeddings, tails, axis=0)
    pe = jnp.take(params.entity_type_projections, entity_types,
                  axis=0).reshape(-1, D, D)
    pr = jnp.take(params.relation_type_projections, relation_types,
                  axis=0).reshape(-1, D, D)
    ph = jnp.einsum("bij,bj->bi", pe, h)
    pt = jnp.einsum("bij,bj->bi", pe, t)
    prj = jnp.einsum("bij,bj->bi", pr, r)
    return jnp.linalg.norm(ph + prj - pt, ord=2, axis=1)


if __name__ == "__main__":
    key = jax.random.PRNGKey(0)

    num_entities = 50
    num_relations = 10
    num_entity_types = 5
    num_relation_types = 3
    embedding_dim = 32
    batch = 8

    pkey, ik = jax.random.split(key)
    params = TransOParams(pkey, num_entities, num_relations,
                          num_entity_types, num_relation_types, embedding_dim)

    k1, k2, k3, k4, k5 = jax.random.split(ik, 5)
    heads = jax.random.randint(k1, (batch,), 0, num_entities)
    relations = jax.random.randint(k2, (batch,), 0, num_relations)
    tails = jax.random.randint(k3, (batch,), 0, num_entities)
    entity_types = jax.random.randint(k4, (batch,), 0, num_entity_types)
    relation_types = jax.random.randint(k5, (batch,), 0, num_relation_types)

    # Out-of-range type ids would silently score 0 inside the kernel (unlike a
    # PyTorch gather, which raises), so validate here where values are concrete.
    assert int(jnp.min(entity_types)) >= 0
    assert int(jnp.max(entity_types)) < num_entity_types
    assert int(jnp.min(relation_types)) >= 0
    assert int(jnp.max(relation_types)) < num_relation_types

    ref = transo_reference(params, heads, relations, tails,
                           entity_types, relation_types)

    # Default path: bf16 MXU operands, f32 accumulation -> loose tolerance.
    scores = transo_forward(params, heads, relations, tails,
                            entity_types, relation_types)
    scores = jax.block_until_ready(scores)
    assert scores.shape == (batch,)
    assert jnp.allclose(scores, ref, atol=2e-3, rtol=2e-2), (scores, ref)

    # Full-precision path: f32 matmul operands -> tight tolerance.
    scores_f32 = transo_forward(params, heads, relations, tails,
                                entity_types, relation_types,
                                matmul_dtype=jnp.float32)
    scores_f32 = jax.block_until_ready(scores_f32)
    assert jnp.allclose(scores_f32, ref, atol=1e-5, rtol=1e-5), (scores_f32, ref)

    # TODO(synk): MarginLoss / compute_loss (training path) not implemented;
    # only the forward scoring path is kernelized.
    print("KERNEL_OK")
</pallas_src>

<mosaic_0001>
module attributes {stable_mosaic.version = 11 : i64} {
  func.func @transo_kernel(%arg0: i32, %arg1: memref<160x32xf32, #tpu.memory_space<vmem>>, %arg2: memref<96x32xf32, #tpu.memory_space<vmem>>, %arg3: memref<32x128xf32, #tpu.memory_space<vmem>>, %arg4: memref<32x128xf32, #tpu.memory_space<vmem>>, %arg5: memref<32x128xf32, #tpu.memory_space<vmem>>, %arg6: memref<1x128xi32, #tpu.memory_space<vmem>>, %arg7: memref<1x128xi32, #tpu.memory_space<vmem>>, %arg8: memref<1x128xf32, #tpu.memory_space<vmem>>) attributes {dimension_semantics = [#tpu.dimension_semantics<parallel>], iteration_bounds = array<i64: 1>, scalar_prefetch = 0 : i64, scratch_operands = 0 : i64, tpu.core_type = #tpu.core_type<tc>, window_params = [{pipeline_mode = #tpu.pipeline_mode<synchronous>, transform_indices = @transform_0, window_bounds = array<i64: 160, 32>}, {pipeline_mode = #tpu.pipeline_mode<synchronous>, transform_indices = @transform_1, window_bounds = array<i64: 96, 32>}, {transform_indices = @transform_2, window_bounds = array<i64: 32, 128>}, {transform_indices = @transform_3, window_bounds = array<i64: 32, 128>}, {transform_indices = @transform_4, window_bounds = array<i64: 32, 128>}, {transform_indices = @transform_5, window_bounds = array<i64: 1, 128>}, {transform_indices = @transform_6, window_bounds = array<i64: 1, 128>}, {transform_indices = @transform_7, window_bounds = array<i64: 1, 128>}]} {
    %c0 = arith.constant 0 : index
    %c0_0 = arith.constant 0 : index
    %0 = vector.load %arg3[%c0, %c0_0] : memref<32x128xf32, #tpu.memory_space<vmem>>, vector<32x128xf32>
    %c0_1 = arith.constant 0 : index
    %c0_2 = arith.constant 0 : index
    %1 = vector.load %arg5[%c0_1, %c0_2] : memref<32x128xf32, #tpu.memory_space<vmem>>, vector<32x128xf32>
    %2 = arith.subf %0, %1 : vector<32x128xf32>
    %c0_3 = arith.constant 0 : index
    %c0_4 = arith.constant 0 : index
    %3 = vector.load %arg6[%c0_3, %c0_4] : memref<1x128xi32, #tpu.memory_space<vmem>>, vector<1x128xi32>
    %c0_5 = arith.constant 0 : index
    %c0_6 = arith.constant 0 : index
    %4 = vector.load %arg7[%c0_5, %c0_6] : memref<1x128xi32, #tpu.memory_space<vmem>>, vector<1x128xi32>
    %c0_7 = arith.constant 0 : index
    %c0_8 = arith.constant 0 : index
    %5 = vector.load %arg1[%c0_7, %c0_8] : memref<160x32xf32, #tpu.memory_space<vmem>>, vector<160x32xf32>
    %6 = arith.truncf %5 : vector<160x32xf32> to vector<160x32xbf16>
    %7 = arith.truncf %2 : vector<32x128xf32> to vector<32x128xbf16>
    %cst = arith.constant dense<0.000000e+00> : vector<160x128xf32>
    %8 = tpu.matmul %6, %7, %cst {dimension_numbers = #tpu.dot_dimension_numbers<[1], [0], [0], [1], [0, 0, 1, 1], [], []>} : vector<160x32xbf16>, vector<32x128xbf16>, vector<160x128xf32> -> vector<160x128xf32>
    %c0_9 = arith.constant 0 : index
    %c0_10 = arith.constant 0 : index
    %9 = vector.load %arg2[%c0_9, %c0_10] : memref<96x32xf32, #tpu.memory_space<vmem>>, vector<96x32xf32>
    %10 = arith.truncf %9 : vector<96x32xf32> to vector<96x32xbf16>
    %c0_11 = arith.constant 0 : index
    %c0_12 = arith.constant 0 : index
    %11 = vector.load %arg4[%c0_11, %c0_12] : memref<32x128xf32, #tpu.memory_space<vmem>>, vector<32x128xf32>
    %12 = arith.truncf %11 : vector<32x128xf32> to vector<32x128xbf16>
    %cst_13 = arith.constant dense<0.000000e+00> : vector<96x128xf32>
    %13 = tpu.matmul %10, %12, %cst_13 {dimension_numbers = #tpu.dot_dimension_numbers<[1], [0], [0], [1], [0, 0, 1, 1], [], []>} : vector<96x32xbf16>, vector<32x128xbf16>, vector<96x128xf32> -> vector<96x128xf32>
    %cst_14 = arith.constant 0.000000e+00 : f32
    %14 = vector.broadcast %cst_14 : f32 to vector<32x128xf32>
    %c0_i32 = arith.constant 0 : i32
    %15 = vector.broadcast %c0_i32 : i32 to vector<1x128xi32>
    %16 = arith.cmpi eq, %3, %15 : vector<1x128xi32>
    %17 = vector.extract_strided_slice %8 {offsets = [0, 0], sizes = [32, 128], strides = [1, 1]} : vector<160x128xf32> to vector<32x128xf32>
    %cst_15 = arith.constant 0.000000e+00 : f32
    %18 = vector.shape_cast %16 : vector<1x128xi1> to vector<1x128xi1>
    %19 = vector.broadcast %18 : vector<1x128xi1> to vector<32x128xi1>
    %20 = vector.broadcast %cst_15 : f32 to vector<32x128xf32>
    %21 = arith.select %19, %17, %20 : vector<32x128xi1>, vector<32x128xf32>
    %22 = arith.addf %14, %21 : vector<32x128xf32>
    %c1_i32 = arith.constant 1 : i32
    %23 = vector.broadcast %c1_i32 : i32 to vector<1x128xi32>
    %24 = arith.cmpi eq, %3, %23 : vector<1x128xi32>
    %25 = vector.extract_strided_slice %8 {offsets = [32, 0], sizes = [32, 128], strides = [1, 1]} : vector<160x128xf32> to vector<32x128xf32>
    %cst_16 = arith.constant 0.000000e+00 : f32
    %26 = vector.shape_cast %24 : vector<1x128xi1> to vector<1x128xi1>
    %27 = vector.broadcast %26 : vector<1x128xi1> to vector<32x128xi1>
    %28 = vector.broadcast %cst_16 : f32 to vector<32x128xf32>
    %29 = arith.select %27, %25, %28 : vector<32x128xi1>, vector<32x128xf32>
    %30 = arith.addf %22, %29 : vector<32x128xf32>
    %c2_i32 = arith.constant 2 : i32
    %31 = vector.broadcast %c2_i32 : i32 to vector<1x128xi32>
    %32 = arith.cmpi eq, %3, %31 : vector<1x128xi32>
    %33 = vector.extract_strided_slice %8 {offsets = [64, 0], sizes = [32, 128], strides = [1, 1]} : vector<160x128xf32> to vector<32x128xf32>
    %cst_17 = arith.constant 0.000000e+00 : f32
    %34 = vector.shape_cast %32 : vector<1x128xi1> to vector<1x128xi1>
    %35 = vector.broadcast %34 : vector<1x128xi1> to vector<32x128xi1>
    %36 = vector.broadcast %cst_17 : f32 to vector<32x128xf32>
    %37 = arith.select %35, %33, %36 : vector<32x128xi1>, vector<32x128xf32>
    %38 = arith.addf %30, %37 : vector<32x128xf32>
    %c3_i32 = arith.constant 3 : i32
    %39 = vector.broadcast %c3_i32 : i32 to vector<1x128xi32>
    %40 = arith.cmpi eq, %3, %39 : vector<1x128xi32>
    %41 = vector.extract_strided_slice %8 {offsets = [96, 0], sizes = [32, 128], strides = [1, 1]} : vector<160x128xf32> to vector<32x128xf32>
    %cst_18 = arith.constant 0.000000e+00 : f32
    %42 = vector.shape_cast %40 : vector<1x128xi1> to vector<1x128xi1>
    %43 = vector.broadcast %42 : vector<1x128xi1> to vector<32x128xi1>
    %44 = vector.broadcast %cst_18 : f32 to vector<32x128xf32>
    %45 = arith.select %43, %41, %44 : vector<32x128xi1>, vector<32x128xf32>
    %46 = arith.addf %38, %45 : vector<32x128xf32>
    %c4_i32 = arith.constant 4 : i32
    %47 = vector.broadcast %c4_i32 : i32 to vector<1x128xi32>
    %48 = arith.cmpi eq, %3, %47 : vector<1x128xi32>
    %49 = vector.extract_strided_slice %8 {offsets = [128, 0], sizes = [32, 128], strides = [1, 1]} : vector<160x128xf32> to vector<32x128xf32>
    %cst_19 = arith.constant 0.000000e+00 : f32
    %50 = vector.shape_cast %48 : vector<1x128xi1> to vector<1x128xi1>
    %51 = vector.broadcast %50 : vector<1x128xi1> to vector<32x128xi1>
    %52 = vector.broadcast %cst_19 : f32 to vector<32x128xf32>
    %53 = arith.select %51, %49, %52 : vector<32x128xi1>, vector<32x128xf32>
    %54 = arith.addf %46, %53 : vector<32x128xf32>
    %c0_i32_20 = arith.constant 0 : i32
    %55 = vector.broadcast %c0_i32_20 : i32 to vector<1x128xi32>
    %56 = arith.cmpi eq, %4, %55 : vector<1x128xi32>
    %57 = vector.extract_strided_slice %13 {offsets = [0, 0], sizes = [32, 128], strides = [1, 1]} : vector<96x128xf32> to vector<32x128xf32>
    %cst_21 = arith.constant 0.000000e+00 : f32
    %58 = vector.shape_cast %56 : vector<1x128xi1> to vector<1x128xi1>
    %59 = vector.broadcast %58 : vector<1x128xi1> to vector<32x128xi1>
    %60 = vector.broadcast %cst_21 : f32 to vector<32x128xf32>
    %61 = arith.select %59, %57, %60 : vector<32x128xi1>, vector<32x128xf32>
    %62 = arith.addf %54, %61 : vector<32x128xf32>
    %c1_i32_22 = arith.constant 1 : i32
    %63 = vector.broadcast %c1_i32_22 : i32 to vector<1x128xi32>
    %64 = arith.cmpi eq, %4, %63 : vector<1x128xi32>
    %65 = vector.extract_strided_slice %13 {offsets = [32, 0], sizes = [32, 128], strides = [1, 1]} : vector<96x128xf32> to vector<32x128xf32>
    %cst_23 = arith.constant 0.000000e+00 : f32
    %66 = vector.shape_cast %64 : vector<1x128xi1> to vector<1x128xi1>
    %67 = vector.broadcast %66 : vector<1x128xi1> to vector<32x128xi1>
    %68 = vector.broadcast %cst_23 : f32 to vector<32x128xf32>
    %69 = arith.select %67, %65, %68 : vector<32x128xi1>, vector<32x128xf32>
    %70 = arith.addf %62, %69 : vector<32x128xf32>
    %c2_i32_24 = arith.constant 2 : i32
    %71 = vector.broadcast %c2_i32_24 : i32 to vector<1x128xi32>
    %72 = arith.cmpi eq, %4, %71 : vector<1x128xi32>
    %73 = vector.extract_strided_slice %13 {offsets = [64, 0], sizes = [32, 128], strides = [1, 1]} : vector<96x128xf32> to vector<32x128xf32>
    %cst_25 = arith.constant 0.000000e+00 : f32
    %74 = vector.shape_cast %72 : vector<1x128xi1> to vector<1x128xi1>
    %75 = vector.broadcast %74 : vector<1x128xi1> to vector<32x128xi1>
    %76 = vector.broadcast %cst_25 : f32 to vector<32x128xf32>
    %77 = arith.select %75, %73, %76 : vector<32x128xi1>, vector<32x128xf32>
    %78 = arith.addf %70, %77 : vector<32x128xf32>
    %79 = arith.mulf %78, %78 : vector<32x128xf32>
    %cst_26 = arith.constant dense<0.000000e+00> : vector<128xf32>
    %80 = vector.multi_reduction <add>, %79, %cst_26 [0] : vector<32x128xf32> to vector<128xf32>
    %81 = vector.shape_cast %80 : vector<128xf32> to vector<1x128xf32>
    %82 = math.sqrt %81 : vector<1x128xf32>
    %c0_27 = arith.constant 0 : index
    %c0_28 = arith.constant 0 : index
    %83 = vector.load %arg8[%c0_27, %c0_28] : memref<1x128xf32, #tpu.memory_space<vmem>>, vector<1x128xf32>
    tpu.vector_store %arg8[%c0_27, %c0_28], %82 {strides = array<i32>} : memref<1x128xf32, #tpu.memory_space<vmem>>, vector<1x128xf32>,
    return
  }
  func.func @transform_0(%arg0: i32) -> (i32, i32) {
    %c0_i32 = arith.constant 0 : i32
    %c0_i32_0 = arith.constant 0 : i32
    %c0_i32_1 = arith.constant 0 : i32
    return %c0_i32, %c0_i32_0 : i32, i32
  }
  func.func @transform_1(%arg0: i32) -> (i32, i32) {
    %c0_i32 = arith.constant 0 : i32
    %c0_i32_0 = arith.constant 0 : i32
    %c0_i32_1 = arith.constant 0 : i32
    return %c0_i32, %c0_i32_0 : i32, i32
  }
  func.func @transform_2(%arg0: i32) -> (i32, i32) {
    %c0_i32 = arith.constant 0 : i32
    %c0_i32_0 = arith.constant 0 : i32
    return %c0_i32, %arg0 : i32, i32
  }
  func.func @transform_3(%arg0: i32) -> (i32, i32) {
    %c0_i32 = arith.constant 0 : i32
    %c0_i32_0 = arith.constant 0 : i32
    return %c0_i32, %arg0 : i32, i32
  }
  func.func @transform_4(%arg0: i32) -> (i32, i32) {
    %c0_i32 = arith.constant 0 : i32
    %c0_i32_0 = arith.constant 0 : i32
    return %c0_i32, %arg0 : i32, i32
  }
  func.func @transform_5(%arg0: i32) -> (i32, i32) {
    %c0_i32 = arith.constant 0 : i32
    %c0_i32_0 = arith.constant 0 : i32
    return %c0_i32, %arg0 : i32, i32
  }
  func.func @transform_6(%arg0: i32) -> (i32, i32) {
    %c0_i32 = arith.constant 0 : i32
    %c0_i32_0 = arith.constant 0 : i32
    return %c0_i32, %arg0 : i32, i32
  }
  func.func @transform_7(%arg0: i32) -> (i32, i32) {
    %c0_i32 = arith.constant 0 : i32
    %c0_i32_0 = arith.constant 0 : i32
    return %c0_i32, %arg0 : i32, i32
  }
}

</mosaic_0001>

<bundles_post_ra>
// kernel: tpu_custom_call.1
= control target key start
LH: loop header
LB: loop body
LE: loop exit
PB: predicated region body
PF: predicated region fallthrough
CT: control target
= control target key end

     0   :  { %vm74_vm0 = vcmask 261120   ;;  %s949_s0 = inlined_call_operand.vmem [shape: f32[160,32], index: 0, kind: input, shape index: {}]   ;;  %s950_s1 = inlined_call_operand.vmem [shape: f32[96,32], index: 1, kind: input, shape index: {}]   ;;  %s951_s2 = inlined_call_operand.vmem [shape: f32[32,128], index: 2, kind: input, shape index: {}]   ;;  %s952_s3 = inlined_call_operand.vmem [shape: f32[32,128], index: 3, kind: input, shape index: {}]   ;;  %s953_s4 = inlined_call_operand.vmem [shape: f32[32,128], index: 4, kind: input, shape index: {}]   ;;  %s954_s5 = inlined_call_operand.vmem [shape: s32[1,128], index: 5, kind: input, shape index: {}]   ;;  %s955_s6 = inlined_call_operand.vmem [shape: s32[1,128], index: 6, kind: input, shape index: {}]   ;;  %s956_s7 = inlined_call_operand.hbm [shape: f32[1,128], index: 7, kind: output, shape index: {}]  }
   0x1   :  { %v30_v0 = vld [vmem:[%s951_s2 + $0x10] sm:$0xff]  ;;  %v31_v1 = vld [vmem:[%s951_s2 + $0x18] sm:$0xff]  ;;  %v28_v5 = vld [vmem:[%s951_s2] sm:$0xff] }
   0x2   :  { %v34_v2 = vld [vmem:[%s953_s4 + $0x10] sm:$0xff]  ;;  %v35_v3 = vld [vmem:[%s953_s4 + $0x18] sm:$0xff]  ;;  %v29_v6 = vld [vmem:[%s951_s2 + $0x8] sm:$0xff] }
   0x3   :  { %v38_v4 = vsub.f32 %v30_v0, %v34_v2  ;;  %v39_v7 = vsub.f32 %v31_v1, %v35_v3  ;;  %v32_v8 = vld [vmem:[%s953_s4] sm:$0xff]  ;;  %v33_v9 = vld [vmem:[%s953_s4 + $0x8] sm:$0xff]  ;;  %v238_v20 = vld [vmem:[%s952_s3 + $0x10] sm:$0xff] }
   0x4   :  { %v42_v10 = vld [vmem:[%s949_s0] sm:$0xff]  ;;  %v36_v11 = vsub.f32 %v28_v5, %v32_v8  ;;  %v37_v12 = vsub.f32 %v29_v6, %v33_v9  ;;  %v43_v13 = vld [vmem:[%s949_s0 + $0x8] sm:$0xff]  ;;  %v239_v21 = vld [vmem:[%s952_s3 + $0x18] sm:$0xff] }
   0x5   :  { %v73_v14 = vpack.c.bf16 %v39_v7, %v38_v4  ;;  %v58_v15 = vld [vmem:[%s949_s0 + $0x80] sm:$0xff]  ;;  %v59_v16 = vld [vmem:[%s949_s0 + $0x88] sm:$0xff]  ;;  %v62_v18 = vpack.c.bf16 %v43_v13, %v42_v10  ;;  %v44_v22 = vld [vmem:[%s949_s0 + $0x10] sm:$0xff]  ;;  %v241_v26 = vpack.c.bf16 %v239_v21, %v238_v20 }
   0x6   :  { %v72_v17 = vpack.c.bf16 %v37_v12, %v36_v11  ;;  %v70_v19 = vpack.c.bf16 %v59_v16, %v58_v15  ;;  %v45_v23 = vld [vmem:[%s949_s0 + $0x18] sm:$0xff]  ;;  %v60_v24 = vld [vmem:[%s949_s0 + $0x90] sm:$0xff]  ;;  %v236_v27 = vld [vmem:[%s952_s3] sm:$0xff] }
   0x7   :  { %532 = vmatprep.subr.bf16.mxu0 %v73_v14  ;;  %572 = vmatprep.subr.bf16.mxu1 %v73_v14  ;;  %v61_v25 = vld [vmem:[%s949_s0 + $0x98] sm:$0xff]  ;;  %v46_v28 = vld [vmem:[%s949_s0 + $0x20] sm:$0xff]  ;;  %v47_v29 = vld [vmem:[%s949_s0 + $0x28] sm:$0xff]  ;;  %v63_v33 = vpack.c.bf16 %v45_v23, %v44_v22 }
   0x8   :  { %533 = vmatpush3.bf16.msra.mxu0 %v73_v14  ;;  %574 = vmatpush3.bf16.msra.mxu1 %v73_v14  ;;  %v237_v30 = vld [vmem:[%s952_s3 + $0x8] sm:$0xff]  ;;  %v218_v31 = vld [vmem:[%s950_s1] sm:$0xff]  ;;  %v71_v34 = vpack.c.bf16 %v61_v25, %v60_v24  ;;  %v64_v35 = vpack.c.bf16 %v47_v29, %v46_v28  ;;  %v48_v38 = vld [vmem:[%s949_s0 + $0x30] sm:$0xff] }
   0x9   :  { %534 = vmatprep.subr.bf16.mxu0 %v72_v17  ;;  %573 = vmatprep.subr.bf16.mxu1 %v72_v17  ;;  %v219_v32 = vld [vmem:[%s950_s1 + $0x8] sm:$0xff]  ;;  %v240_v36 = vpack.c.bf16 %v237_v30, %v236_v27  ;;  %v49_v39 = vld [vmem:[%s949_s0 + $0x38] sm:$0xff]  ;;  %v220_v40 = vld [vmem:[%s950_s1 + $0x10] sm:$0xff] }
   0xa   :  { %536 = vmatprep.mubr.msk.bf16.mxu0 %vm74_vm0, %v62_v18  ;;  %552 = vmatprep.mubr.msk.bf16.mxu1 %vm74_vm0, %v70_v19  ;;  %v230_v37 = vpack.c.bf16 %v219_v32, %v218_v31  ;;  %v221_v41 = vld [vmem:[%s950_s1 + $0x18] sm:$0xff]  ;;  %v50_v42 = vld [vmem:[%s949_s0 + $0x40] sm:$0xff] }
   0xc   :  { %535 = vmatpush3.bf16.msra.mxu0 %v72_v17  ;;  %575 = vmatpush3.bf16.msra.mxu1 %v72_v17 }
   0xd   :  { %556 = vmatprep.subr.bf16.mxu1 %v241_v26 }
   0xf   :  { %537 = vmatmul.mubr.msk.bf16.vlgmr.msra.gmra.mxu0 %vm74_vm0, %v63_v33  ;;  %553 = vmatmul.mubr.msk.bf16.vlgmr.msra.gmra.mxu1 %vm74_vm0, %v71_v34 }
  0x10   :  { %557 = vmatpush3.bf16.msra.mxu1 %v241_v26  ;;  %540 = vmatprep.mubr.msk.bf16.mxu0 %vm74_vm0, %v64_v35 }
  0x11   :  { %12 = vsyncpa [#allocation3], 0  ;;  %558 = vmatprep.subr.bf16.mxu1 %v240_v36  ;;  %560 = vmatprep.mubr.msk.bf16.mxu1 %vm74_vm0, %v230_v37  ;;  %v51_v43 = vld [vmem:[%s949_s0 + $0x48] sm:$0xff]  ;;  %v222_v44 = vld [vmem:[%s950_s1 + $0x20] sm:$0xff]  ;;  %v65_v46 = vpack.c.bf16 %v49_v39, %v48_v38  ;;  %v231_v47 = vpack.c.bf16 %v221_v41, %v220_v40  ;;  %v343_v6 = vlaneseq  ;;  %v602_v18 = vmov 0  }
  0x12   :  { %v223_v45 = vld [vmem:[%s950_s1 + $0x28] sm:$0xff]  ;;  %v66_v48 = vpack.c.bf16 %v51_v43, %v50_v42  ;;  %v52_v50 = vld [vmem:[%s949_s0 + $0x50] sm:$0xff]  ;;  %v53_v51 = vld [vmem:[%s949_s0 + $0x58] sm:$0xff] }
  0x13   :  { %v232_v49 = vpack.c.bf16 %v223_v45, %v222_v44  ;;  %v224_v52 = vld [vmem:[%s950_s1 + $0x30] sm:$0xff]  ;;  %v225_v53 = vld [vmem:[%s950_s1 + $0x38] sm:$0xff]  ;;  %v54_v54 = vld [vmem:[%s949_s0 + $0x60] sm:$0xff]  ;;  %v67_v58 = vpack.c.bf16 %v53_v51, %v52_v50  ;;  %v344_v12 = vshrl.u32 %v343_v6, 7 }
  0x14   :  { %559 = vmatpush3.bf16.msra.mxu1 %v240_v36  ;;  %v55_v55 = vld [vmem:[%s949_s0 + $0x68] sm:$0xff]  ;;  %v226_v56 = vld [vmem:[%s950_s1 + $0x40] sm:$0xff]  ;;  %v233_v59 = vpack.c.bf16 %v225_v53, %v224_v52  ;;  %v56_v62 = vld [vmem:[%s949_s0 + $0x70] sm:$0xff] }
  0x15   :  { %v227_v57 = vld [vmem:[%s950_s1 + $0x48] sm:$0xff]  ;;  %v68_v60 = vpack.c.bf16 %v55_v55, %v54_v54  ;;  %v57_v63 = vld [vmem:[%s949_s0 + $0x78] sm:$0xff]  ;;  %v228_v0 = vld [vmem:[%s950_s1 + $0x50] sm:$0xff]  ;;  %v809_v17 = vsub.s32 0, %v344_v12 }
  0x16   :  { %v234_v61 = vpack.c.bf16 %v227_v57, %v226_v56  ;;  %v229_v1 = vld [vmem:[%s950_s1 + $0x58] sm:$0xff]  ;;  %v69_v2 = vpack.c.bf16 %v57_v63, %v56_v62  ;;  %v40_v9 = vld [vmem:[%s954_s5] sm:$0x1] }
  0x17   :  { %541 = vmatmul.mubr.msk.bf16.gmra.mxu0 %vm74_vm0, %v65_v46  ;;  %561 = vmatmul.mubr.msk.bf16.vlgmr.msra.gmra.mxu1 %vm74_vm0, %v231_v47  ;;  %v235_v3 = vpack.c.bf16 %v229_v1, %v228_v0  ;;  %vm356_vm1 = vcmp.eq.s32.totalorder %v40_v9, 1  ;;  %vm341_vm2 = vcmp.eq.s32.totalorder %v40_v9, 0  ;;  %vm371_vm3 = vcmp.eq.s32.totalorder %v40_v9, 2  ;;  %v41_v23 = vld [vmem:[%s955_s6] sm:$0x1]  ;;  %s603_s6 = smov [#allocation2]  }
  0x18   :  { %544 = vmatprep.mubr.msk.bf16.mxu0 %vm74_vm0, %v66_v48  ;;  %564 = vmatprep.mubr.msk.bf16.mxu1 %vm74_vm0, %v232_v49  ;;  %v357_v19 = vsel %vm356_vm1, 1, %v602_v18  ;;  %v342_v20 = vsel %vm341_vm2, 1, %v602_v18  ;;  %v372_v24 = vsel %vm371_vm3, 1, %v602_v18  ;;  %vm401_vm4 = vcmp.eq.s32.totalorder %v40_v9, 4  ;;  %s488_s13 = sshll.u32 %s603_s6, 4  ;;  %s489_s13 = int_to_ptr.vmem [resolvable:$true] %s488_s13 }
  0x19   :  { %v361_v25 = vrot.slane %v357_v19, %v809_v17  ;;  %vm386_vm5 = vcmp.eq.s32.totalorder %v40_v9, 3  ;;  %v346_v28 = vrot.slane %v342_v20, %v809_v17  ;;  %vm416_vm6 = vcmp.eq.s32.totalorder %v41_v23, 0  ;;  %s580_s14 = scalar_lea.vmem %s489_s13, 16  ;;  %s584_s15 = scalar_lea.vmem %s489_s13, 32 }
  0x1a   :  { %v376_v30 = vrot.slane %v372_v24, %v809_v17  ;;  %v402_v32 = vsel %vm401_vm4, 1, %v602_v18  ;;  %v387_v33 = vsel %vm386_vm5, 1, %v602_v18  ;;  %v417_v38 = vsel %vm416_vm6, 1, %v602_v18  ;;  %p581_p0 = scmp.ne.s32.totalorder %s489_s13, %s580_s14  ;;  %p585_p1 = scmp.lt.s32.totalorder %s489_s13, %s489_s13 }
  0x1b   :  { %vm823_vm7 = vcmp.eq.s32.totalorder %v361_v25, 1  ;;  %vm829_vm8 = vcmp.eq.s32.totalorder %v346_v28, 1  ;;  %v406_v39 = vrot.slane %v402_v32, %v809_v17  ;;  %vm431_vm10 = vcmp.eq.s32.totalorder %v41_v23, 1  ;;  %p586_p2 = scmp.lt.s32.totalorder %s584_s15, %s580_s14 }
  0x1c   :  { %vm834_vm9 = vcmp.eq.s32.totalorder %v376_v30, 1  ;;  %v391_v43 = vrot.slane %v387_v33, %v809_v17  ;;  %v421_v45 = vrot.slane %v417_v38, %v809_v17  ;;  %v432_v51 = vsel %vm431_vm10, 1, %v602_v18 }
  0x1d   :  { %vm852_vm11 = vcmp.eq.s32.totalorder %v406_v39, 1  ;;  %vm446_vm13 = vcmp.eq.s32.totalorder %v41_v23, 2  ;;  %v436_v63 = vrot.slane %v432_v51, %v809_v17  ;;  %p587_p3 = por %p586_p2, %p585_p1 }
  0x1e   :  { %vm856_vm12 = vcmp.eq.s32.totalorder %v391_v43, 1  ;;  %vm868_vm14 = vcmp.eq.s32.totalorder %v421_v45, 1  ;;  %v447_v19 = vsel %vm446_vm13, 1, %v602_v18 }
  0x1f   :  { %545 = vmatmul.mubr.msk.bf16.gmra.mxu0 %vm74_vm0, %v67_v58  ;;  %565 = vmatmul.mubr.msk.bf16.gmra.mxu1 %vm74_vm0, %v233_v59  ;;  %vm895_vm15 = vcmp.eq.s32.totalorder %v436_v63, 1  ;;  %v451_v34 = vrot.slane %v447_v19, %v809_v17  ;;  %p588_p4 = pnand %p587_p3, %p581_p0 }
  0x20   :  { %548 = vmatprep.mubr.msk.bf16.mxu0 %vm74_vm0, %v68_v60  ;;  %568 = vmatprep.mubr.msk.bf16.mxu1 %vm74_vm0, %v234_v61 }
  0x27   :  { %549 = vmatmul.mubr.msk.bf16.gmra.mxu0 %vm74_vm0, %v69_v2  ;;  %569 = vmatmul.mubr.msk.bf16.gmra.mxu1 %vm74_vm0, %v235_v3  ;;  %vm922_vm0 = vcmp.eq.s32.totalorder %v451_v34, 1 }
  0xcf   :  { %v538_v4 = vpop.f32.mrf.mxu0  ;;  %v792_v5 = vpop.f32.mrf.mxu1 }
  0xd0   :  { %v350_v48 = vsel %vm829_vm8, %v538_v4, 0.0  ;;  %v410_v20 = vsel %vm852_vm11, %v792_v5, 0.0 }
  0xd1   :  { %v139_v7 = vpop.f32.mrf.mxu0  ;;  %v794_v8 = vpop.f32.mrf.mxu1 }
  0xd2   :  { %v348_v57 = vsel %vm829_vm8, %v139_v7, 0.0  ;;  %v408_v5 = vsel %vm852_vm11, %v794_v8, 0.0 }
  0xd3   :  { %v799_v10 = vpop.f32.mrf.mxu0  ;;  %v801_v11 = vpop.f32.mrf.mxu1 }
  0xd4   :  { %v351_v2 = vsel %vm829_vm8, %v799_v10, 0.0  ;;  %v411_v38 = vsel %vm852_vm11, %v801_v11, 0.0 }
  0xd5   :  { %v803_v13 = vpop.f32.mrf.mxu0  ;;  %v805_v14 = vpop.f32.mrf.mxu1 }
  0xd6   :  { %v349_v10 = vsel %vm829_vm8, %v803_v13, 0.0  ;;  %v409_v11 = vsel %vm852_vm11, %v805_v14, 0.0 }
  0xd7   :  { %v542_v15 = vpop.f32.mrf.mxu0  ;;  %v807_v16 = vpop.f32.mrf.mxu1 }
  0xd8   :  { %v365_v44 = vsel %vm823_vm7, %v542_v15, 0.0  ;;  %v425_v8 = vsel %vm868_vm14, %v807_v16, 0.0 }
  0xd9   :  { %v155_v21 = vpop.f32.mrf.mxu0  ;;  %v811_v22 = vpop.f32.mrf.mxu1  ;;  %v369_v53 = vadd.f32 %v365_v44, %v350_v48 }
  0xda   :  { %v363_v49 = vsel %vm823_vm7, %v155_v21, 0.0  ;;  %v423_v39 = vsel %vm868_vm14, %v811_v22, 0.0 }
  0xdb   :  { %v543_v26 = vpop.f32.mrf.mxu0  ;;  %v817_v27 = vpop.f32.mrf.mxu1  ;;  %v367_v60 = vadd.f32 %v363_v49, %v348_v57 }
  0xdc   :  { %v366_v58 = vsel %vm823_vm7, %v543_v26, 0.0  ;;  %v426_v16 = vsel %vm868_vm14, %v817_v27, 0.0 }
  0xdd   :  { %v158_v29 = vpop.f32.mrf.mxu0  ;;  %v821_v31 = vpop.f32.mrf.mxu1  ;;  %v370_v7 = vadd.f32 %v366_v58, %v351_v2 }
  0xde   :  { %v364_v3 = vsel %vm823_vm7, %v158_v29, 0.0  ;;  %v424_v51 = vsel %vm868_vm14, %v821_v31, 0.0 }
  0xdf   :  { %v546_v35 = vpop.f32.mrf.mxu0  ;;  %v827_v36 = vpop.f32.mrf.mxu1  ;;  %v368_v24 = vadd.f32 %v364_v3, %v349_v10 }
  0xe0   :  { %v380_v50 = vsel %vm834_vm9, %v546_v35, 0.0  ;;  %v440_v14 = vsel %vm895_vm15, %v827_v36, 0.0 }
  0xe1   :  { %v171_v41 = vpop.f32.mrf.mxu0  ;;  %v838_v42 = vpop.f32.mrf.mxu1  ;;  %v384_v62 = vadd.f32 %v380_v50, %v369_v53 }
  0xe2   :  { %v378_v59 = vsel %vm834_vm9, %v171_v41, 0.0  ;;  %v438_v22 = vsel %vm895_vm15, %v838_v42, 0.0 }
  0xe3   :  { %v547_v46 = vpop.f32.mrf.mxu0  ;;  %v844_v47 = vpop.f32.mrf.mxu1  ;;  %v382_v9 = vadd.f32 %v378_v59, %v367_v60 }
  0xe4   :  { %v381_v4 = vsel %vm834_vm9, %v547_v46, 0.0  ;;  %v441_v42 = vsel %vm895_vm15, %v844_v47, 0.0 }
  0xe5   :  { %v174_v54 = vpop.f32.mrf.mxu0  ;;  %v860_v56 = vpop.f32.mrf.mxu1  ;;  %v385_v25 = vadd.f32 %v381_v4, %v370_v7 }
  0xe6   :  { %v379_v21 = vsel %vm834_vm9, %v174_v54, 0.0  ;;  %v439_v54 = vsel %vm895_vm15, %v860_v56, 0.0 }
  0xe7   :  { %v550_v0 = vpop.f32.mrf.mxu0  ;;  %v570_v1 = vpop.f32.mrf.mxu1  ;;  %v383_v32 = vadd.f32 %v379_v21, %v368_v24 }
  0xe8   :  { %v395_v6 = vsel %vm856_vm12, %v550_v0, 0.0  ;;  %v455_v55 = vsel %vm922_vm0, %v570_v1, 0.0 }
  0xe9   :  { %v399_v12 = vadd.f32 %v395_v6, %v384_v62  ;;  %v187_v15 = vpop.f32.mrf.mxu0  ;;  %v326_v18 = vpop.f32.mrf.mxu1 }
  0xea   :  { %v393_v23 = vsel %vm856_vm12, %v187_v15, 0.0  ;;  %v453_v31 = vsel %vm922_vm0, %v326_v18, 0.0 }
  0xeb   :  { %v414_v26 = vadd.f32 %v410_v20, %v399_v12  ;;  %v397_v28 = vadd.f32 %v393_v23, %v382_v9  ;;  %v551_v29 = vpop.f32.mrf.mxu0  ;;  %v571_v45 = vpop.f32.mrf.mxu1 }
  0xec   :  { %v396_v13 = vsel %vm856_vm12, %v551_v29, 0.0  ;;  %v456_v47 = vsel %vm922_vm0, %v571_v45, 0.0 }
  0xed   :  { %v412_v33 = vadd.f32 %v408_v5, %v397_v28  ;;  %v400_v35 = vadd.f32 %v396_v13, %v385_v25  ;;  %v190_v37 = vpop.f32.mrf.mxu0  ;;  %v429_v41 = vadd.f32 %v425_v8, %v414_v26  ;;  %v329_v52 = vpop.f32.mrf.mxu1 }
  0xee   :  { %v394_v40 = vsel %vm856_vm12, %v190_v37, 0.0  ;;  %v454_v59 = vsel %vm922_vm0, %v329_v52, 0.0 }
  0xef   :  { %v415_v43 = vadd.f32 %v411_v38, %v400_v35  ;;  %v427_v17 = vadd.f32 %v423_v39, %v412_v33  ;;  %v398_v44 = vadd.f32 %v394_v40, %v383_v32  ;;  %v444_v27 = vadd.f32 %v440_v14, %v429_v41 }
  0xf1   :  { %v442_v48 = vadd.f32 %v438_v22, %v427_v17  ;;  %v413_v49 = vadd.f32 %v409_v11, %v398_v44  ;;  %v430_v50 = vadd.f32 %v426_v16, %v415_v43  ;;  %v459_v60 = vadd.f32 %v455_v55, %v444_v27 }
  0xf3   :  { %v428_v53 = vadd.f32 %v424_v51, %v413_v49  ;;  %v457_v57 = vadd.f32 %v453_v31, %v442_v48  ;;  %v445_v58 = vadd.f32 %v441_v42, %v430_v50  ;;  %v463_v0 = vmul.f32 %v459_v60, %v459_v60 }
  0xf5   :  { %v443_v36 = vadd.f32 %v439_v54, %v428_v53  ;;  %v461_v62 = vmul.f32 %v457_v57, %v457_v57  ;;  %v460_v63 = vadd.f32 %v456_v47, %v445_v58 }
  0xf7   :  { %v458_v61 = vadd.f32 %v454_v59, %v443_v36  ;;  %v464_v1 = vmul.f32 %v460_v63, %v460_v63 }
  0xf9   :  { %v462_v56 = vmul.f32 %v458_v61, %v458_v61 }
  0xfb   :  { %v465_v2 = vadd.f32 %v462_v56, %v461_v62 }
  0xfd   :  { %v466_v3 = vadd.f32 %v465_v2, %v463_v0 }
  0xff   :  { %v467_v4 = vadd.f32 %v466_v3, %v464_v1 }
 0x101   :  { %v468_v6 = vrot.slane %v467_v4, 4 }
 0x103   :  { %v469_v7 = vadd.f32 %v468_v6, %v467_v4 }
 0x105   :  { %v470_v9 = vrot.slane %v469_v7, 2 }
 0x107   :  { %v471_v12 = vadd.f32 %v470_v9, %v469_v7 }
 0x109   :  { %v472_v15 = vrot.slane %v471_v12, 1 }
 0x10b   :  { %v473_v19 = vadd.f32 %v472_v15, %v471_v12 }
 0x10d   :  { %578 = vrsqrt.f32 %v473_v19  ;;  %vm476_vm1 = vcmp.eq.f32.partialorder %v473_v19, inf  ;;  %v479_v21 = vand.u32 2147483648, %v473_v19  ;;  %vm478_vm2 = vcmp.eq.f32.partialorder %v473_v19, 0.0 }
 0x11a   :  { %v579_v20 = vpop.eup %578 }
 0x11b   :  { %v475_v10 = vmul.f32 %v579_v20, %v473_v19 }
 0x11d   :  { %v477_v23 = vsel %vm476_vm1, %v473_v19, %v475_v10 }
 0x11e   :  { %v480_v24 = vsel %vm478_vm2, %v479_v21, %v477_v23 }
 0x11f   :  { %481 = vst [vmem:[#allocation2] sm:$0x1] %v480_v24 }
 0x120   :  { %591 = shalt.err (!%p588_p4)
}
 0x121   :  { %491 = dma.vmem_to_hbm [thread:$0]  %s489_s13, 16, %s956_s7, [#allocation3]  }
 0x122   :  { %600 = dma.done.wait [#allocation3], 16  }
 0x123   :  { %601 = vsyncadd [#allocation3], 4294967280 }
 0x124   :  { %495 = vsyncpa [#allocation3], 1 }

</bundles_post_ra>
